<compile_context>
chip_gen: v7x
topology: tpu7x:2x2x1
jax: 0.10.0
libtpu: 0.0.40
codegen_flags: <defaults>
</compile_context>

<pallas_src>
import jax
import jax.numpy as jnp
from jax.experimental import pallas as pl
from jax.experimental.pallas import tpu as pltpu

LANE = 128          # vreg lane width
SUBLANE = 8         # vreg sublane count (f32)
NEG_INF = -1e30     # class-mask value baked into the padded fc3 bias (not -inf: avoids inf-inf NaN)
MAX_TILE_B = 8192   # VMEM budget guard (double-buffered x+out tiles stay << 32 MiB scoped limit)
MIN_SPLIT_ROWS = 256  # don't split a single-tile batch below this many rows per step


def _round_up(n, m):
    return ((n + m - 1) // m) * m


def _pick_tile_b(B, tile_b):
    """Pick the batch tile: big tiles amortize the ~600-cycle per-step overhead."""
    tile_b = min(tile_b, MAX_TILE_B)
    if B > tile_b:
        return tile_b                                   # >= 2 grid steps already
    if B >= 2 * MIN_SPLIT_ROWS:
        return _round_up(pl.cdiv(B, 2), SUBLANE)        # 2 steps -> megacore on v7x
    return _round_up(B, SUBLANE)                        # one small sublane-aligned tile


# ----------------------------------------------------------------------------- kernel
def _mlp_kernel(x_ref, w1_ref, b1_ref, w2_ref, b2_ref, w3_ref, b3_ref, o_ref):
    dtype = w1_ref.dtype                                             # f32 or bf16
    x = x_ref[...].astype(dtype)                                     # (TB, 84)

    # fc1 + relu. K=84 contraction: Mosaic pads/zero-masks the tail lanes internally.
    h1 = jnp.dot(x, w1_ref[...], preferred_element_type=jnp.float32) + b1_ref[...]
    h1 = jnp.maximum(h1, 0.0).astype(dtype)                          # (TB, 128)

    # fc2 + relu (padded hidden lanes stay exactly 0: zero W rows/cols, zero bias).
    h2 = jnp.dot(h1, w2_ref[...], preferred_element_type=jnp.float32) + b2_ref[...]
    h2 = jnp.maximum(h2, 0.0).astype(dtype)

    # fc3. Padded class lanes carry bias -1e30 -> exp underflows to exactly 0 below,
    # so no iota/compare/select is needed in the kernel.
    logits = jnp.dot(h2, w3_ref[...], preferred_element_type=jnp.float32) + b3_ref[...]

    # log_softmax over the class axis (max-shifted, stable). exp/log -> EUP,
    # cross-lane max/sum -> XLU; both off the VPU/MXU critical path.
    m = jnp.max(logits, axis=1, keepdims=True)
    shifted = logits - m
    lse = jnp.log(jnp.sum(jnp.exp(shifted), axis=1, keepdims=True))
    o_ref[...] = (shifted - lse).astype(o_ref.dtype)


# ----------------------------------------------------------------------------- wrapper
def pad_params(params, weights_dtype=jnp.float32):
    """Pad weights/biases so every *output* dim is a multiple of 128.

    w1 keeps its real input dim (84) because x enters the kernel unpadded.
    Zero padding keeps real outputs exact; b3's padded lanes are set to -1e30 so the
    padded class lanes are dead in the log-sum-exp. Biases stay f32 even when the
    weights are bf16 (accumulation is f32).
    """
    def pad_w(w, pad_in):
        di, do = w.shape
        pi = (_round_up(di, LANE) - di) if pad_in else 0
        return jnp.pad(w, ((0, pi), (0, _round_up(do, LANE) - do))).astype(weights_dtype)

    def pad_b(b, fill=0.0):
        do = b.shape[-1]
        return jnp.pad(b, ((0, 0), (0, _round_up(do, LANE) - do)),
                       constant_values=fill).astype(jnp.float32)

    return {
        "w1": pad_w(params["w1"], pad_in=False),   # (84, 128)
        "b1": pad_b(params["b1"]),
        "w2": pad_w(params["w2"], pad_in=True),    # (128, 128)
        "b2": pad_b(params["b2"]),
        "w3": pad_w(params["w3"], pad_in=True),    # (128, 128)
        "b3": pad_b(params["b3"], fill=NEG_INF),   # class mask baked into the bias
    }


def mlp_forward(x, padded_params, *, n_classes=10, tile_b=1024, return_padded=False):
    """x: (B, 84) float. Returns (B, n_classes) log-probs (or (B, 128) if return_padded)."""
    B, D = x.shape
    w1, b1 = padded_params["w1"], padded_params["b1"]
    w2, b2 = padded_params["w2"], padded_params["b2"]
    w3, b3 = padded_params["w3"], padded_params["b3"]
    assert w1.shape[0] == D, "w1 input dim must match x feature dim (unpadded)"
    D_pad = w1.shape[1]
    C_pad = w3.shape[1]

    tile_b = _pick_tile_b(B, tile_b)
    grid = (pl.cdiv(B, tile_b),)          # ragged last block handled by Pallas masking
    const2d = lambda i: (0, 0)            # weights/biases: one block, resident in VMEM

    nbytes = lambda a: int(a.size) * a.dtype.itemsize
    cost = pl.CostEstimate(
        flops=2 * B * (D * D_pad + D_pad * D_pad + D_pad * C_pad),
        transcendentals=B * (C_pad + 1),
        bytes_accessed=nbytes(x) + sum(nbytes(p) for p in (w1, b1, w2, b2, w3, b3))
                       + B * C_pad * 4,
    )

    out = pl.pallas_call(
        _mlp_kernel,
        out_shape=jax.ShapeDtypeStruct((B, C_pad), jnp.float32),
        grid=grid,
        in_specs=[
            pl.BlockSpec((tile_b, D), lambda i: (i, 0)),   # x tile, unpadded, pipelined
            pl.BlockSpec((D, D_pad), const2d),             # w1 (84, 128)
            pl.BlockSpec((1, D_pad), const2d),             # b1
            pl.BlockSpec((D_pad, D_pad), const2d),         # w2
            pl.BlockSpec((1, D_pad), const2d),             # b2
            pl.BlockSpec((D_pad, C_pad), const2d),         # w3
            pl.BlockSpec((1, C_pad), const2d),             # b3 (pad lanes = -1e30)
        ],
        out_specs=pl.BlockSpec((tile_b, C_pad), lambda i: (i, 0)),   # lane-dense store
        compiler_params=pltpu.CompilerParams(
            dimension_semantics=("parallel",),             # batch axis -> megacore on v7x
        ),
        cost_estimate=cost,
    )(x, w1, b1, w2, b2, w3, b3)

    if return_padded:
        return out                         # (B, 128): no extra HBM pass for the slice
    return out[:, :n_classes]


# ----------------------------------------------------------------------------- reference / init
def init_params(key, d=84, n_classes=10):
    """Deterministic init mirroring nn.Linear's U(-1/sqrt(fan_in), 1/sqrt(fan_in))."""
    ks = jax.random.split(key, 6)

    def linear(kw, kb, fan_in, fan_out):
        bound = 1.0 / jnp.sqrt(jnp.float32(fan_in))
        w = jax.random.uniform(kw, (fan_in, fan_out), jnp.float32, -bound, bound)
        b = jax.random.uniform(kb, (1, fan_out), jnp.float32, -bound, bound)
        return w, b

    w1, b1 = linear(ks[0], ks[1], d, d)
    w2, b2 = linear(ks[2], ks[3], d, d)
    w3, b3 = linear(ks[4], ks[5], d, n_classes)
    return {"w1": w1, "b1": b1, "w2": w2, "b2": b2, "w3": w3, "b3": b3}


def mlp_ref(x, p):
    h1 = jnp.maximum(x @ p["w1"] + p["b1"], 0.0)
    h2 = jnp.maximum(h1 @ p["w2"] + p["b2"], 0.0)
    logits = h2 @ p["w3"] + p["b3"]
    return jax.nn.log_softmax(logits, axis=1)


if __name__ == "__main__":
    key = jax.random.PRNGKey(0)
    k_params, k_x1, k_x2, k_x3 = jax.random.split(key, 4)

    d, n_classes = 84, 10
    params = init_params(k_params, d=d, n_classes=n_classes)
    padded = pad_params(params)   # one-time padding (zero W pads, -1e30 class-mask bias)

    # Case 1: multi-step ragged grid (grid=(3,), last block partial, no batch padding).
    b1 = 300
    x1 = jax.random.normal(k_x1, (b1, d), dtype=jnp.float32)
    out1 = jax.block_until_ready(mlp_forward(x1, padded, n_classes=n_classes, tile_b=128))
    ref1 = mlp_ref(x1, params)
    assert out1.shape == (b1, n_classes)
    assert jnp.allclose(out1, ref1, atol=1e-4, rtol=1e-4)

    # Case 2: tiny batch, default tile -> one small sublane-aligned tile.
    b2 = 8
    x2 = jax.random.normal(k_x2, (b2, d), dtype=jnp.float32)
    out2 = jax.block_until_ready(mlp_forward(x2, padded, n_classes=n_classes))
    ref2 = mlp_ref(x2, params)
    assert out2.shape == (b2, n_classes)
    assert jnp.allclose(out2, ref2, atol=1e-4, rtol=1e-4)

    # Case 3: optional bf16 weights (f32 accumulation); looser tolerance for bf16 rounding.
    padded_bf16 = pad_params(params, weights_dtype=jnp.bfloat16)
    b3 = 64
    x3 = jax.random.normal(k_x3, (b3, d), dtype=jnp.float32)
    out3 = jax.block_until_ready(mlp_forward(x3, padded_bf16, n_classes=n_classes))
    ref3 = mlp_ref(x3, params)
    assert out3.shape == (b3, n_classes)
    assert jnp.allclose(out3, ref3, atol=1e-1, rtol=1e-1)

    print("KERNEL_OK")
</pallas_src>

<mosaic_0001>
module attributes {stable_mosaic.version = 11 : i64} {
  func.func @_mlp_kernel(%arg0: i32, %arg1: memref<128x84xf32, #tpu.memory_space<vmem>>, %arg2: memref<84x128xf32, #tpu.memory_space<vmem>>, %arg3: memref<1x128xf32, #tpu.memory_space<vmem>>, %arg4: memref<128x128xf32, #tpu.memory_space<vmem>>, %arg5: memref<1x128xf32, #tpu.memory_space<vmem>>, %arg6: memref<128x128xf32, #tpu.memory_space<vmem>>, %arg7: memref<1x128xf32, #tpu.memory_space<vmem>>, %arg8: memref<128x128xf32, #tpu.memory_space<vmem>>) attributes {dimension_semantics = [#tpu.dimension_semantics<parallel>], iteration_bounds = array<i64: 3>, scalar_prefetch = 0 : i64, scratch_operands = 0 : i64, tpu.core_type = #tpu.core_type<tc>, window_params = [{transform_indices = @transform_0, window_bounds = array<i64: 128, 84>}, {pipeline_mode = #tpu.pipeline_mode<synchronous>, transform_indices = @transform_1, window_bounds = array<i64: 84, 128>}, {pipeline_mode = #tpu.pipeline_mode<synchronous>, transform_indices = @transform_2, window_bounds = array<i64: 1, 128>}, {pipeline_mode = #tpu.pipeline_mode<synchronous>, transform_indices = @transform_3, window_bounds = array<i64: 128, 128>}, {pipeline_mode = #tpu.pipeline_mode<synchronous>, transform_indices = @transform_4, window_bounds = array<i64: 1, 128>}, {pipeline_mode = #tpu.pipeline_mode<synchronous>, transform_indices = @transform_5, window_bounds = array<i64: 128, 128>}, {pipeline_mode = #tpu.pipeline_mode<synchronous>, transform_indices = @transform_6, window_bounds = array<i64: 1, 128>}, {transform_indices = @transform_7, window_bounds = array<i64: 128, 128>}]} {
    %c0 = arith.constant 0 : index
    %c0_0 = arith.constant 0 : index
    %0 = vector.load %arg1[%c0, %c0_0] : memref<128x84xf32, #tpu.memory_space<vmem>>, vector<128x84xf32>
    %c0_1 = arith.constant 0 : index
    %c0_2 = arith.constant 0 : index
    %1 = vector.load %arg2[%c0_1, %c0_2] : memref<84x128xf32, #tpu.memory_space<vmem>>, vector<84x128xf32>
    %cst = arith.constant dense<0.000000e+00> : vector<128x128xf32>
    %2 = tpu.matmul %0, %1, %cst {dimension_numbers = #tpu.dot_dimension_numbers<[1], [0], [0], [1], [0, 0, 1, 1], [], []>} : vector<128x84xf32>, vector<84x128xf32>, vector<128x128xf32> -> vector<128x128xf32>
    %c0_3 = arith.constant 0 : index
    %c0_4 = arith.constant 0 : index
    %3 = vector.load %arg3[%c0_3, %c0_4] : memref<1x128xf32, #tpu.memory_space<vmem>>, vector<1x128xf32>
    %4 = vector.broadcast %3 : vector<1x128xf32> to vector<128x128xf32>
    %5 = arith.addf %2, %4 : vector<128x128xf32>
    %cst_5 = arith.constant 0.000000e+00 : f32
    %6 = vector.broadcast %cst_5 : f32 to vector<128x128xf32>
    %7 = arith.maximumf %5, %6 : vector<128x128xf32>
    %c0_6 = arith.constant 0 : index
    %c0_7 = arith.constant 0 : index
    %8 = vector.load %arg4[%c0_6, %c0_7] : memref<128x128xf32, #tpu.memory_space<vmem>>, vector<128x128xf32>
    %cst_8 = arith.constant dense<0.000000e+00> : vector<128x128xf32>
    %9 = tpu.matmul %7, %8, %cst_8 {dimension_numbers = #tpu.dot_dimension_numbers<[1], [0], [0], [1], [0, 0, 1, 1], [], []>} : vector<128x128xf32>, vector<128x128xf32>, vector<128x128xf32> -> vector<128x128xf32>
    %c0_9 = arith.constant 0 : index
    %c0_10 = arith.constant 0 : index
    %10 = vector.load %arg5[%c0_9, %c0_10] : memref<1x128xf32, #tpu.memory_space<vmem>>, vector<1x128xf32>
    %11 = vector.broadcast %10 : vector<1x128xf32> to vector<128x128xf32>
    %12 = arith.addf %9, %11 : vector<128x128xf32>
    %cst_11 = arith.constant 0.000000e+00 : f32
    %13 = vector.broadcast %cst_11 : f32 to vector<128x128xf32>
    %14 = arith.maximumf %12, %13 : vector<128x128xf32>
    %c0_12 = arith.constant 0 : index
    %c0_13 = arith.constant 0 : index
    %15 = vector.load %arg6[%c0_12, %c0_13] : memref<128x128xf32, #tpu.memory_space<vmem>>, vector<128x128xf32>
    %cst_14 = arith.constant dense<0.000000e+00> : vector<128x128xf32>
    %16 = tpu.matmul %14, %15, %cst_14 {dimension_numbers = #tpu.dot_dimension_numbers<[1], [0], [0], [1], [0, 0, 1, 1], [], []>} : vector<128x128xf32>, vector<128x128xf32>, vector<128x128xf32> -> vector<128x128xf32>
    %c0_15 = arith.constant 0 : index
    %c0_16 = arith.constant 0 : index
    %17 = vector.load %arg7[%c0_15, %c0_16] : memref<1x128xf32, #tpu.memory_space<vmem>>, vector<1x128xf32>
    %18 = vector.broadcast %17 : vector<1x128xf32> to vector<128x128xf32>
    %19 = arith.addf %16, %18 : vector<128x128xf32>
    %cst_17 = arith.constant dense<0xFF800000> : vector<128xf32>
    %20 = vector.multi_reduction <maximumf>, %19, %cst_17 [1] : vector<128x128xf32> to vector<128xf32>
    %21 = vector.shape_cast %20 : vector<128xf32> to vector<128x1xf32>
    %22 = vector.broadcast %21 : vector<128x1xf32> to vector<128x128xf32>
    %23 = arith.subf %19, %22 : vector<128x128xf32>
    %24 = math.exp %23 : vector<128x128xf32>
    %cst_18 = arith.constant dense<0.000000e+00> : vector<128xf32>
    %25 = vector.multi_reduction <add>, %24, %cst_18 [1] : vector<128x128xf32> to vector<128xf32>
    %26 = vector.shape_cast %25 : vector<128xf32> to vector<128x1xf32>
    %27 = math.log %26 : vector<128x1xf32>
    %28 = vector.broadcast %27 : vector<128x1xf32> to vector<128x128xf32>
    %29 = arith.subf %23, %28 : vector<128x128xf32>
    %c0_19 = arith.constant 0 : index
    %c0_20 = arith.constant 0 : index
    %30 = vector.load %arg8[%c0_19, %c0_20] : memref<128x128xf32, #tpu.memory_space<vmem>>, vector<128x128xf32>
    tpu.vector_store %arg8[%c0_19, %c0_20], %29 {strides = array<i32>} : memref<128x128xf32, #tpu.memory_space<vmem>>, vector<128x128xf32>,
    return
  }
  func.func @transform_0(%arg0: i32) -> (i32, i32) {
    %c0_i32 = arith.constant 0 : i32
    %c0_i32_0 = arith.constant 0 : i32
    return %arg0, %c0_i32 : i32, i32
  }
  func.func @transform_1(%arg0: i32) -> (i32, i32) {
    %c0_i32 = arith.constant 0 : i32
    %c0_i32_0 = arith.constant 0 : i32
    %c0_i32_1 = arith.constant 0 : i32
    return %c0_i32, %c0_i32_0 : i32, i32
  }
  func.func @transform_2(%arg0: i32) -> (i32, i32) {
    %c0_i32 = arith.constant 0 : i32
    %c0_i32_0 = arith.constant 0 : i32
    %c0_i32_1 = arith.constant 0 : i32
    return %c0_i32, %c0_i32_0 : i32, i32
  }
  func.func @transform_3(%arg0: i32) -> (i32, i32) {
    %c0_i32 = arith.constant 0 : i32
    %c0_i32_0 = arith.constant 0 : i32
    %c0_i32_1 = arith.constant 0 : i32
    return %c0_i32, %c0_i32_0 : i32, i32
  }
  func.func @transform_4(%arg0: i32) -> (i32, i32) {
    %c0_i32 = arith.constant 0 : i32
    %c0_i32_0 = arith.constant 0 : i32
    %c0_i32_1 = arith.constant 0 : i32
    return %c0_i32, %c0_i32_0 : i32, i32
  }
  func.func @transform_5(%arg0: i32) -> (i32, i32) {
    %c0_i32 = arith.constant 0 : i32
    %c0_i32_0 = arith.constant 0 : i32
    %c0_i32_1 = arith.constant 0 : i32
    return %c0_i32, %c0_i32_0 : i32, i32
  }
  func.func @transform_6(%arg0: i32) -> (i32, i32) {
    %c0_i32 = arith.constant 0 : i32
    %c0_i32_0 = arith.constant 0 : i32
    %c0_i32_1 = arith.constant 0 : i32
    return %c0_i32, %c0_i32_0 : i32, i32
  }
  func.func @transform_7(%arg0: i32) -> (i32, i32) {
    %c0_i32 = arith.constant 0 : i32
    %c0_i32_0 = arith.constant 0 : i32
    return %arg0, %c0_i32 : i32, i32
  }
}

</mosaic_0001>

<bundles_post_ra>
// kernel: tpu_custom_call.1
= control target key start
LH: loop header
LB: loop body
LE: loop exit
PB: predicated region body
PF: predicated region fallthrough
CT: control target
= control target key end

     0   :  { %12 = vsyncpa [#allocation3], 0  ;;  %s2193_s0 = inlined_call_operand.vmem [shape: f32[300,84], index: 0, kind: input, shape index: {}]   ;;  %s2194_s1 = inlined_call_operand.vmem [shape: f32[84,128], index: 1, kind: input, shape index: {}]   ;;  %s2195_s2 = inlined_call_operand.vmem [shape: f32[1,128], index: 2, kind: input, shape index: {}]   ;;  %s2196_s3 = inlined_call_operand.vmem [shape: f32[128,128], index: 3, kind: input, shape index: {}]   ;;  %s2197_s4 = inlined_call_operand.vmem [shape: f32[1,128], index: 4, kind: input, shape index: {}]   ;;  %s2198_s5 = inlined_call_operand.vmem [shape: f32[128,128], index: 5, kind: input, shape index: {}]   ;;  %s2199_s6 = inlined_call_operand.vmem [shape: f32[1,128], index: 6, kind: input, shape index: {}]   ;;  %s2200_s7 = inlined_call_operand.hbm [shape: f32[300,128], index: 7, kind: output, shape index: {}]  }
   0x1   :  { %14 = vsyncpa [#allocation3 + $0x1], 0  ;;  %s1759_s24 = smov 0   ;;  %s1761_s25 = smov 0  }
   0x2   :  { %s1763_s26 = smov 0   ;;  %s1765_s27 = smov 0  }
   0x3 LB: > { %s1780_s28 = sadd.s32 4294967295, %s1714_s27   ;;  %s1162_s29 = sadd.s32 4294967294, %s1714_s27   ;;  %s1714_s27 = sphi %s1765_s27, %s2206_s27   ;;  %s1710_s26 = sphi %s1763_s26, %s2205_s26   ;;  %s1706_s25 = sphi %s1761_s25, %s2204_s25   ;;  %s1702_s24 = sphi %s1759_s24, %s2203_s24  }
   0x4   : > { %s1784_s30 = sadd.s32 1, %s1714_s27   ;;  %s179_s8 = sadd.s32 1, %s1710_s26 }
   0x5   : > { %s176_s9 = ssub.s32 %s1714_s27, %s1784_s30  ;;  %p189_p0 = scmp.ne.s32.totalorder %s1710_s26, %s1706_s25 }
   0x6   : > { %p177_p1 = scmp.eq.s32.totalorder %s176_s9, 0  ;;  %p190_p2 = scmp.eq.s32.totalorder %s1780_s28, 2 }
   0x7   : > { %p195_p3 = scmp.ne.s32.totalorder %s1706_s25, %s1702_s24  ;;  %p196_p4 = scmp.eq.s32.totalorder %s1162_s29, 2 }
   0x8   : > { %s1795_s10 = scalar_select %p177_p1, %s1710_s26, %s179_s8  }
   0x9   : > { %p1797_p5 = por %p190_p2, %p189_p0  ;;  %p1801_p6 = por %p196_p4, %p195_p3 }
   0xa   : > { %p1165_p7 = scmp.ge.s32.totalorder %s1714_s27, 1  ;;  %p249_p8 = scmp.lt.s32.totalorder %s1714_s27, 4 }
   0xc   : > { %p250_p9 = pnand %p1165_p7, %p249_p8 }
   0xd   : > { %v320_v0 = vld [vmem:[%s2194_s1] sm:$0xff] (!%p250_p9)  ;;  %v321_v1 = vld [vmem:[%s2194_s1 + $0x8] sm:$0xff] (!%p250_p9)  ;;  %v322_v2 = vld [vmem:[%s2194_s1 + $0x10] sm:$0xff] (!%p250_p9)  ;;  %s1817_s19 = sshll.u32 (!%p250_p9), %s1780_s28, 4  ;;  %vm338_vm0 = vcmask (!%p250_p9), 687104   ;;  %vm387_vm1 = vcmask (!%p250_p9), 1043456  }
   0xe   : > { %253 = sbr.rel (%p250_p9) target bundleno = 1064 (0x428), region = 48  ;;  %v1448_v3 = vpack.c.bf16 (!%p250_p9), %v321_v1, %v320_v0  ;;  %v323_v4 = vld [vmem:[%s2194_s1 + $0x18] sm:$0xff] (!%p250_p9)  ;;  %p290_p10 = scmp.lt.s32.totalorder (!%p250_p9), %s1817_s19, 37  ;;  %v324_v6 = vld [vmem:[%s2194_s1 + $0x20] sm:$0xff] (!%p250_p9)  ;;  %v325_v7 = vld [vmem:[%s2194_s1 + $0x28] sm:$0xff] (!%p250_p9) }
   0xf   : > { %v1452_v5 = vpack.c.bf16 (!%p250_p9), %v323_v4, %v322_v2  ;;  %v552_v8 = vld [vmem:[%s2196_s3] sm:$0xff] (!%p250_p9)  ;;  %v553_v9 = vld [vmem:[%s2196_s3 + $0x8] sm:$0xff] (!%p250_p9)  ;;  %v554_v10 = vld [vmem:[%s2196_s3 + $0x10] sm:$0xff] (!%p250_p9)  ;;  %v1456_v12 = vpack.c.bf16 (!%p250_p9), %v325_v7, %v324_v6 }
  0x10   : > { %1449 = vmatprep.subr.bf16.mxu0 (!%p250_p9), %v1448_v3  ;;  %v555_v11 = vld [vmem:[%s2196_s3 + $0x18] sm:$0xff] (!%p250_p9)  ;;  %v1468_v13 = vpack.c.bf16 (!%p250_p9), %v553_v9, %v552_v8  ;;  %v326_v14 = vld [vmem:[%s2194_s1 + $0x30] sm:$0xff] (!%p250_p9)  ;;  %v556_v18 = vld [vmem:[%s2196_s3 + $0x20] sm:$0xff] (!%p250_p9) }
  0x11   : > { %1451 = vmatpush3.bf16.msra.mxu0 (!%p250_p9), %v1448_v3  ;;  %v327_v15 = vld [vmem:[%s2194_s1 + $0x38] sm:$0xff] (!%p250_p9)  ;;  %v1472_v16 = vpack.c.bf16 (!%p250_p9), %v555_v11, %v554_v10  ;;  %v557_v19 = vld [vmem:[%s2196_s3 + $0x28] sm:$0xff] (!%p250_p9)  ;;  %v328_v21 = vld [vmem:[%s2194_s1 + $0x40] sm:$0xff] (!%p250_p9) }
  0x12   : > { %1453 = vmatprep.subr.bf16.mxu0 (!%p250_p9), %v1452_v5  ;;  %1469 = vmatprep.subr.bf16.mxu1 (!%p250_p9), %v1468_v13  ;;  %v1460_v20 = vpack.c.bf16 (!%p250_p9), %v327_v15, %v326_v14  ;;  %v329_v22 = vld [vmem:[%s2194_s1 + $0x48] sm:$0xff] (!%p250_p9)  ;;  %v1476_v23 = vpack.c.bf16 (!%p250_p9), %v557_v19, %v556_v18  ;;  %v558_v24 = vld [vmem:[%s2196_s3 + $0x30] sm:$0xff] (!%p250_p9)  ;;  %v559_v25 = vld [vmem:[%s2196_s3 + $0x38] sm:$0xff] (!%p250_p9) }
  0x13   : > { %1471 = vmatpush3.bf16.msra.mxu1 (!%p250_p9), %v1468_v13  ;;  %v1464_v26 = vpack.c.bf16 (!%p250_p9), %v329_v22, %v328_v21  ;;  %v1480_v27 = vpack.c.bf16 (!%p250_p9), %v559_v25, %v558_v24  ;;  %v560_v28 = vld [vmem:[%s2196_s3 + $0x40] sm:$0xff] (!%p250_p9)  ;;  %v561_v29 = vld [vmem:[%s2196_s3 + $0x48] sm:$0xff] (!%p250_p9)  ;;  %v330_v30 = vld [vmem:[%s2194_s1 + $0x50] sm:$0xf] (!%p250_p9) }
  0x14   : > { %1473 = vmatprep.subr.bf16.mxu1 (!%p250_p9), %v1472_v16  ;;  %v1484_v31 = vpack.c.bf16 (!%p250_p9), %v561_v29, %v560_v28  ;;  %v562_v32 = vld [vmem:[%s2196_s3 + $0x50] sm:$0xff] (!%p250_p9)  ;;  %v563_v33 = vld [vmem:[%s2196_s3 + $0x58] sm:$0xff] (!%p250_p9)  ;;  %v564_v37 = vld [vmem:[%s2196_s3 + $0x60] sm:$0xff] (!%p250_p9) }
  0x15   : > { %s291_s9 = scalar_select %p290_p10, %s1817_s19, 37  ;;  %1455 = vmatpush3.bf16.msra.mxu0 %v1452_v5  ;;  %v1488_v35 = vpack.c.bf16 %v563_v33, %v562_v32  ;;  %v565_v38 = vld [vmem:[%s2196_s3 + $0x68] sm:$0xff]  ;;  %v566_v53 = vld [vmem:[%s2196_s3 + $0x70] sm:$0xff]  ;;  %v567_v54 = vld [vmem:[%s2196_s3 + $0x78] sm:$0xff] }
  0x16   : > { %1457 = vmatprep.subr.bf16.mxu0 %v1456_v12  ;;  %v1492_v40 = vpack.c.bf16 %v565_v38, %v564_v37  ;;  %v1496_v55 = vpack.c.bf16 %v567_v54, %v566_v53  ;;  %v736_v56 = vld [vmem:[%s2198_s5] sm:$0xff]  ;;  %v737_v57 = vld [vmem:[%s2198_s5 + $0x8] sm:$0xff]  ;;  %v738_v58 = vld [vmem:[%s2198_s5 + $0x10] sm:$0xff]  ;;  %s1089_s13 = ssub.s32 (%p1797_p5), 38, %s1817_s19 }
  0x17   : > { %s1168_s22 = sshll.u32 %s291_s9, 3  ;;  %1475 = vmatpush3.bf16.msra.mxu1 %v1472_v16  ;;  %v1500_v59 = vpack.c.bf16 %v737_v57, %v736_v56  ;;  %v739_v60 = vld [vmem:[%s2198_s5 + $0x18] sm:$0xff]  ;;  %v740_v62 = vld [vmem:[%s2198_s5 + $0x20] sm:$0xff]  ;;  %v741_v63 = vld [vmem:[%s2198_s5 + $0x28] sm:$0xff]  ;;  %p1090_p11 = scmp.lt.s32.totalorder (%p1797_p5), %s1089_s13, 16 }
  0x18   : > { %s1851_s16 = scalar_lea.vmem %s2193_s0, %s1168_s22  ;;  %1477 = vmatprep.subr.bf16.mxu1 %v1476_v23  ;;  %v1504_v61 = vpack.c.bf16 %v739_v60, %v738_v58  ;;  %v1508_v0 = vpack.c.bf16 %v741_v63, %v740_v62  ;;  %v742_v1 = vld [vmem:[%s2198_s5 + $0x30] sm:$0xff]  ;;  %v743_v2 = vld [vmem:[%s2198_s5 + $0x38] sm:$0xff]  ;;  %v744_v4 = vld [vmem:[%s2198_s5 + $0x40] sm:$0xff]  ;;  %s282_s22 = sand.u32 1, %s1706_s25  }
  0x19   : > { %v304_v17 = vld [vmem:[%s1851_s16] sm:$0xff]  ;;  %1459 = vmatpush3.bf16.msra.mxu0 %v1456_v12  ;;  %v305_v34 = vld [vmem:[%s1851_s16 + $0x8] sm:$0xff]  ;;  %v306_v36 = vld [vmem:[%s1851_s16 + $0x10] sm:$0xff]  ;;  %v1954_v3 = vpack.c.bf16 %v743_v2, %v742_v1  ;;  %s1166_s23 = sshll.u32 %s282_s22, 7  ;;  %s2132_s8 = scalar_lea.sflag [#allocation3], %s282_s22 }
  0x1a   : > { %1312 = vmatprep.mubr.msk.f32.mxu0 %vm338_vm0, %v304_v17  ;;  %1461 = vmatprep.subr.bf16.mxu0 %v1460_v20  ;;  %v307_v39 = vld [vmem:[%s1851_s16 + $0x18] sm:$0xff]  ;;  %v308_v41 = vld [vmem:[%s1851_s16 + $0x20] sm:$0xff]  ;;  %v309_v42 = vld [vmem:[%s1851_s16 + $0x28] sm:$0xff]  ;;  %s2097_s29 = scalar_lea.vmem [#allocation2], %s1166_s23 }
  0x1b   : > { %1479 = vmatpush3.bf16.msra.mxu1 %v1476_v23  ;;  %v310_v43 = vld [vmem:[%s1851_s16 + $0x30] sm:$0xff]  ;;  %v311_v44 = vld [vmem:[%s1851_s16 + $0x38] sm:$0xff]  ;;  %v312_v45 = vld [vmem:[%s1851_s16 + $0x40] sm:$0xff] }
  0x1c   : > { %1481 = vmatprep.subr.bf16.mxu1 %v1480_v27  ;;  %v313_v46 = vld [vmem:[%s1851_s16 + $0x48] sm:$0xff]  ;;  %v314_v47 = vld [vmem:[%s1851_s16 + $0x50] sm:$0xff]  ;;  %v315_v48 = vld [vmem:[%s1851_s16 + $0x58] sm:$0xff] }
  0x1d   : > { %1463 = vmatpush3.bf16.msra.mxu0 %v1460_v20  ;;  %v316_v49 = vld [vmem:[%s1851_s16 + $0x60] sm:$0xff]  ;;  %v317_v50 = vld [vmem:[%s1851_s16 + $0x68] sm:$0xff]  ;;  %v318_v51 = vld [vmem:[%s1851_s16 + $0x70] sm:$0xff] }
  0x1e   : > { %1465 = vmatprep.subr.bf16.mxu0 %v1464_v26  ;;  %v319_v52 = vld [vmem:[%s1851_s16 + $0x78] sm:$0xff]  ;;  %v745_v5 = vld [vmem:[%s2198_s5 + $0x48] sm:$0xff]  ;;  %v746_v7 = vld [vmem:[%s2198_s5 + $0x50] sm:$0xff] }
  0x1f   : > { %1483 = vmatpush3.bf16.msra.mxu1 %v1480_v27  ;;  %v1963_v6 = vpack.c.bf16 %v745_v5, %v744_v4  ;;  %v747_v8 = vld [vmem:[%s2198_s5 + $0x58] sm:$0xff]  ;;  %v748_v10 = vld [vmem:[%s2198_s5 + $0x60] sm:$0xff]  ;;  %v749_v11 = vld [vmem:[%s2198_s5 + $0x68] sm:$0xff] }
  0x20   : > { %1485 = vmatprep.subr.bf16.mxu1 %v1484_v31  ;;  %v1973_v9 = vpack.c.bf16 %v747_v8, %v746_v7  ;;  %v1983_v12 = vpack.c.bf16 %v749_v11, %v748_v10  ;;  %v1991_v13 = vld [vmem:[%s2195_s2] ss:$0 sm:$0xff]  ;;  %v750_v62 = vld [vmem:[%s2198_s5 + $0x70] sm:$0xff]  ;;  %v751_v63 = vld [vmem:[%s2198_s5 + $0x78] sm:$0xff] }
  0x21   : > { %1467 = vmatpush3.bf16.msra.mxu0 %v1464_v26  ;;  %v1187_v1 = vld [vmem:[%s2197_s4] ss:$0 sm:$0xff] }
  0x22   : > { %1310 = vmatprep.subr.msk.mxu0 %vm387_vm1, %v330_v30 }
  0x23   : > { %1487 = vmatpush3.bf16.msra.mxu1 %v1484_v31 }
  0x24   : > { %1489 = vmatprep.subr.bf16.mxu1 %v1488_v35 }
  0x25   : > { %1311 = vmatpush3.msk.msra.mxu0 %vm387_vm1, %v330_v30 }
  0x26   : > { %1313 = vmatmul.mubr.msk.f32.vlgmr.msra.gmra.mrb[0].mxu0 %vm338_vm0, %v305_v34  ;;  %1501 = vmatprep.subr.bf16.mxu0 %v1500_v59 }
  0x27   : > { %1315 = vmatprep.mubr.msk.f32.mxu0 %vm338_vm0, %v306_v36  ;;  %1491 = vmatpush3.bf16.msra.mxu1 %v1488_v35 }
  0x28   : > { %1493 = vmatprep.subr.bf16.mxu1 %v1492_v40  ;;  %1503 = vmatpush3.bf16.msra.mxu0 %v1500_v59 }
  0x29   : > { %1505 = vmatprep.subr.bf16.mxu0 %v1504_v61 }
  0x2a   : > { %1316 = vmatmul.mubr.msk.f32.gmra.mrb[2].mxu0 %vm338_vm0, %v307_v39 }
  0x2b   : > { %1318 = vmatprep.mubr.msk.f32.mxu0 %vm338_vm0, %v308_v41  ;;  %1495 = vmatpush3.bf16.msra.mxu1 %v1492_v40 }
  0x2c   : > { %1497 = vmatprep.subr.bf16.mxu1 %v1496_v55  ;;  %1507 = vmatpush3.bf16.msra.mxu0 %v1504_v61 }
  0x2d   : > { %1509 = vmatprep.subr.bf16.mxu0 %v1508_v0 }
  0x2e   : > { %1319 = vmatmul.mubr.msk.f32.gmra.mrb[4].mxu0 %vm338_vm0, %v309_v42 }
  0x2f   : > { %1321 = vmatprep.mubr.msk.f32.mxu0 %vm338_vm0, %v310_v43  ;;  %1499 = vmatpush3.bf16.msra.mxu1 %v1496_v55 }
  0x30   : > { %1532 = vmatprep.subr.bf16.mxu1 %v1500_v59  ;;  %1511 = vmatpush3.bf16.msra.mxu0 %v1508_v0 }
  0x31   : > { %1513 = vmatprep.subr.bf16.mxu0 %v1954_v3 }
  0x32   : > { %1322 = vmatmul.mubr.msk.f32.gmra.mrb[6].mxu0 %vm338_vm0, %v311_v44 }
  0x33   : > { %1324 = vmatprep.mubr.msk.f32.mxu0 %vm338_vm0, %v312_v45 }
  0x34   : > { %1515 = vmatpush3.bf16.msra.mxu0 %v1954_v3 }
  0x35   : > { %1517 = vmatprep.subr.bf16.mxu0 %v1963_v6 }
  0x36   : > { %1325 = vmatmul.mubr.msk.f32.gmra.mrb[8].mxu0 %vm338_vm0, %v313_v46 }
  0x37   : > { %1327 = vmatprep.mubr.msk.f32.mxu0 %vm338_vm0, %v314_v47 }
  0x38   : > { %1519 = vmatpush3.bf16.msra.mxu0 %v1963_v6 }
  0x39   : > { %1521 = vmatprep.subr.bf16.mxu0 %v1973_v9 }
  0x3a   : > { %1328 = vmatmul.mubr.msk.f32.gmra.mrb[10].mxu0 %vm338_vm0, %v315_v48 }
  0x3b   : > { %1330 = vmatprep.mubr.msk.f32.mxu0 %vm338_vm0, %v316_v49 }
  0x3c   : > { %1523 = vmatpush3.bf16.msra.mxu0 %v1973_v9 }
  0x3d   : > { %1525 = vmatprep.subr.bf16.mxu0 %v1983_v12 }
  0x3e   : > { %1331 = vmatmul.mubr.msk.f32.gmra.mrb[12].mxu0 %vm338_vm0, %v317_v50 }
  0x3f   : > { %1333 = vmatprep.mubr.msk.f32.mxu0 %vm338_vm0, %v318_v51 }
  0x40   : > { %1527 = vmatpush3.bf16.msra.mxu0 %v1983_v12 }
  0x42   : > { %1334 = vmatmul.mubr.msk.f32.gmra.mrb[14].mxu0 %vm338_vm0, %v319_v52 }
  0xf9   : > { %v1314_v14 = vpop.f32.mrb[0].mxu0 }
  0xfa   : > { %v463_v15 = vadd.f32 %v1314_v14, %v1991_v13  ;;  %v457_v16 = vpop.f32.mrb[1].mxu0 }
  0xfb   : > { %v458_v17 = vadd.f32 %v1991_v13, %v457_v16 }
  0xfc   : > { %v537_v20 = vmax.f32 %v463_v15, 0.0 }
  0xfd   : > { %v1317_v18 = vpop.f32.mrb[2].mxu0  ;;  %v536_v19 = vmax.f32 %v458_v17, 0.0 }
  0xfe   : > { %v473_v21 = vadd.f32 %v1317_v18, %v1991_v13  ;;  %v467_v22 = vpop.f32.mrb[3].mxu0 }
  0xff   : > { %v468_v23 = vadd.f32 %v1991_v13, %v467_v22  ;;  %1368 = vmatprep.mubr.f32.mxu1 %v536_v19 }
 0x100   : > { %1369 = vmatmul.mubr.f32.vlgmr.msra.gmra.mrb[0].mxu1 %v537_v20  ;;  %v539_v26 = vmax.f32 %v473_v21, 0.0 }
 0x101   : > { %v538_v24 = vmax.f32 %v468_v23, 0.0  ;;  %v1320_v25 = vpop.f32.mrb[4].mxu0  ;;  %1540 = vmatpush3.bf16.msra.mxu1 %v1500_v59 }
 0x102   : > { %v483_v27 = vadd.f32 %v1320_v25, %v1991_v13  ;;  %v477_v28 = vpop.f32.mrb[5].mxu0  ;;  %1533 = vmatprep.subr.bf16.mxu1 %v1504_v61 }
 0x103   : > { %v478_v29 = vadd.f32 %v1991_v13, %v477_v28  ;;  %1371 = vmatprep.mubr.f32.mxu1 %v538_v24 }
 0x104   : > { %v541_v30 = vmax.f32 %v483_v27, 0.0  ;;  %1372 = vmatmul.mubr.f32.gmra.mrb[2].mxu1 %v539_v26 }
 0x105   : > { %v540_v31 = vmax.f32 %v478_v29, 0.0  ;;  %v1323_v32 = vpop.f32.mrb[6].mxu0  ;;  %1541 = vmatpush3.bf16.msra.mxu1 %v1504_v61 }
 0x106   : > { %v493_v33 = vadd.f32 %v1323_v32, %v1991_v13  ;;  %v487_v34 = vpop.f32.mrb[7].mxu0  ;;  %1534 = vmatprep.subr.bf16.mxu1 %v1508_v0 }
 0x107   : > { %v488_v35 = vadd.f32 %v1991_v13, %v487_v34  ;;  %1374 = vmatprep.mubr.f32.mxu1 %v540_v31 }
 0x108   : > { %v543_v36 = vmax.f32 %v493_v33, 0.0  ;;  %1375 = vmatmul.mubr.f32.gmra.mrb[4].mxu1 %v541_v30 }
 0x109   : > { %v542_v37 = vmax.f32 %v488_v35, 0.0  ;;  %v1326_v38 = vpop.f32.mrb[8].mxu0  ;;  %1542 = vmatpush3.bf16.msra.mxu1 %v1508_v0  ;;  %v1528_v0 = vpack.c.bf16 %v751_v63, %v750_v62 }
 0x10a   : > { %v503_v39 = vadd.f32 %v1326_v38, %v1991_v13  ;;  %v497_v40 = vpop.f32.mrb[9].mxu0  ;;  %1535 = vmatprep.subr.bf16.mxu1 %v1954_v3 }
 0x10b   : > { %v498_v41 = vadd.f32 %v1991_v13, %v497_v40  ;;  %1377 = vmatprep.mubr.f32.mxu1 %v542_v37  ;;  %1529 = vmatprep.subr.bf16.mxu0 %v1528_v0 }
 0x10c   : > { %v545_v42 = vmax.f32 %v503_v39, 0.0  ;;  %1378 = vmatmul.mubr.f32.gmra.mrb[6].mxu1 %v543_v36  ;;  %1531 = vmatpush3.bf16.msra.mxu0 %v1528_v0 }
 0x10d   : > { %v544_v43 = vmax.f32 %v498_v41, 0.0  ;;  %v1329_v44 = vpop.f32.mrb[10].mxu0  ;;  %1543 = vmatpush3.bf16.msra.mxu1 %v1954_v3 }
 0x10e   : > { %v513_v45 = vadd.f32 %v1329_v44, %v1991_v13  ;;  %v507_v46 = vpop.f32.mrb[11].mxu0  ;;  %1536 = vmatprep.subr.bf16.mxu1 %v1963_v6 }
 0x10f   : > { %v508_v47 = vadd.f32 %v1991_v13, %v507_v46  ;;  %1380 = vmatprep.mubr.f32.mxu1 %v544_v43 }
 0x110   : > { %v547_v48 = vmax.f32 %v513_v45, 0.0  ;;  %1381 = vmatmul.mubr.f32.gmra.mrb[8].mxu1 %v545_v42 }
 0x111   : > { %v546_v49 = vmax.f32 %v508_v47, 0.0  ;;  %v1332_v50 = vpop.f32.mrb[12].mxu0  ;;  %1544 = vmatpush3.bf16.msra.mxu1 %v1963_v6 }
 0x112   : > { %v523_v51 = vadd.f32 %v1332_v50, %v1991_v13  ;;  %v517_v52 = vpop.f32.mrb[13].mxu0  ;;  %1537 = vmatprep.subr.bf16.mxu1 %v1973_v9  ;;  %v1188_v50 = vld [vmem:[%s2199_s6] ss:$0 sm:$0xff] }
 0x113   : > { %v518_v53 = vadd.f32 %v1991_v13, %v517_v52  ;;  %1383 = vmatprep.mubr.f32.mxu1 %v546_v49 }
 0x114   : > { %v549_v54 = vmax.f32 %v523_v51, 0.0  ;;  %1384 = vmatmul.mubr.f32.gmra.mrb[10].mxu1 %v547_v48 }
 0x115   : > { %v548_v55 = vmax.f32 %v518_v53, 0.0  ;;  %v1335_v56 = vpop.f32.mrb[14].mxu0  ;;  %1545 = vmatpush3.bf16.msra.mxu1 %v1973_v9 }
 0x116   : > { %v533_v57 = vadd.f32 %v1335_v56, %v1991_v13  ;;  %v527_v58 = vpop.f32.mrb[15].mxu0  ;;  %1538 = vmatprep.subr.bf16.mxu1 %v1983_v12 }
 0x117   : > { %v528_v59 = vadd.f32 %v1991_v13, %v527_v58  ;;  %1386 = vmatprep.mubr.f32.mxu1 %v548_v55 }
 0x118   : > { %v551_v60 = vmax.f32 %v533_v57, 0.0  ;;  %1387 = vmatmul.mubr.f32.gmra.mrb[12].mxu1 %v549_v54 }
 0x119   : > { %v550_v61 = vmax.f32 %v528_v59, 0.0  ;;  %1546 = vmatpush3.bf16.msra.mxu1 %v1983_v12 }
 0x11a   : > { %1539 = vmatprep.subr.bf16.mxu1 %v1528_v0 }
 0x11b   : > { %1389 = vmatprep.mubr.f32.mxu1 %v550_v61 }
 0x11c   : > { %1390 = vmatmul.mubr.f32.gmra.mrb[14].mxu1 %v551_v60 }
 0x11d   : > { %1547 = vmatpush3.bf16.msra.mxu1 %v1528_v0 }
 0x1d3   : > { %v1370_v2 = vpop.f32.mrb[0].mxu1 }
 0x1d4   : > { %v647_v3 = vadd.f32 %v1370_v2, %v1187_v1  ;;  %v641_v4 = vpop.f32.mrb[1].mxu1 }
 0x1d5   : > { %v642_v5 = vadd.f32 %v1187_v1, %v641_v4 }
 0x1d6   : > { %v721_v8 = vmax.f32 %v647_v3, 0.0 }
 0x1d7   : > { %v720_v6 = vmax.f32 %v642_v5, 0.0  ;;  %v1373_v7 = vpop.f32.mrb[2].mxu1 }
 0x1d8   : > { %v657_v9 = vadd.f32 %v1373_v7, %v1187_v1  ;;  %v651_v10 = vpop.f32.mrb[3].mxu1 }
 0x1d9   : > { %v652_v11 = vadd.f32 %v1187_v1, %v651_v10  ;;  %1424 = vmatprep.mubr.f32.mxu0 %v720_v6 }
 0x1da   : > { %1425 = vmatmul.mubr.f32.vlgmr.msra.gmra.mrb[16].mxu0 %v721_v8  ;;  %v723_v14 = vmax.f32 %v657_v9, 0.0 }
 0x1db   : > { %v722_v12 = vmax.f32 %v652_v11, 0.0  ;;  %v1376_v13 = vpop.f32.mrb[4].mxu1 }
 0x1dc   : > { %v667_v15 = vadd.f32 %v1376_v13, %v1187_v1  ;;  %v661_v16 = vpop.f32.mrb[5].mxu1 }
 0x1dd   : > { %v662_v17 = vadd.f32 %v1187_v1, %v661_v16  ;;  %1427 = vmatprep.mubr.f32.mxu0 %v722_v12 }
 0x1de   : > { %v725_v18 = vmax.f32 %v667_v15, 0.0  ;;  %1428 = vmatmul.mubr.f32.gmra.mrb[18].mxu0 %v723_v14 }
 0x1df   : > { %v724_v19 = vmax.f32 %v662_v17, 0.0  ;;  %v1379_v20 = vpop.f32.mrb[6].mxu1 }
 0x1e0   : > { %v677_v21 = vadd.f32 %v1379_v20, %v1187_v1  ;;  %v671_v22 = vpop.f32.mrb[7].mxu1 }
 0x1e1   : > { %v672_v23 = vadd.f32 %v1187_v1, %v671_v22  ;;  %1430 = vmatprep.mubr.f32.mxu0 %v724_v19 }
 0x1e2   : > { %v727_v24 = vmax.f32 %v677_v21, 0.0  ;;  %1431 = vmatmul.mubr.f32.gmra.mrb[20].mxu0 %v725_v18 }
 0x1e3   : > { %v726_v25 = vmax.f32 %v672_v23, 0.0  ;;  %v1382_v26 = vpop.f32.mrb[8].mxu1 }
 0x1e4   : > { %v687_v27 = vadd.f32 %v1382_v26, %v1187_v1  ;;  %v681_v28 = vpop.f32.mrb[9].mxu1 }
 0x1e5   : > { %v682_v29 = vadd.f32 %v1187_v1, %v681_v28  ;;  %1433 = vmatprep.mubr.f32.mxu0 %v726_v25 }
 0x1e6   : > { %v729_v30 = vmax.f32 %v687_v27, 0.0  ;;  %1434 = vmatmul.mubr.f32.gmra.mrb[22].mxu0 %v727_v24 }
 0x1e7   : > { %v728_v31 = vmax.f32 %v682_v29, 0.0  ;;  %v1385_v32 = vpop.f32.mrb[10].mxu1 }
 0x1e8   : > { %v697_v33 = vadd.f32 %v1385_v32, %v1187_v1  ;;  %v691_v34 = vpop.f32.mrb[11].mxu1 }
 0x1e9   : > { %v692_v35 = vadd.f32 %v1187_v1, %v691_v34  ;;  %1436 = vmatprep.mubr.f32.mxu0 %v728_v31 }
 0x1ea   : > { %v731_v36 = vmax.f32 %v697_v33, 0.0  ;;  %1437 = vmatmul.mubr.f32.gmra.mrb[24].mxu0 %v729_v30 }
 0x1eb   : > { %v730_v37 = vmax.f32 %v692_v35, 0.0  ;;  %v1388_v38 = vpop.f32.mrb[12].mxu1 }
 0x1ec   : > { %v707_v39 = vadd.f32 %v1388_v38, %v1187_v1  ;;  %v701_v40 = vpop.f32.mrb[13].mxu1 }
 0x1ed   : > { %v702_v41 = vadd.f32 %v1187_v1, %v701_v40  ;;  %1439 = vmatprep.mubr.f32.mxu0 %v730_v37 }
 0x1ee   : > { %v733_v42 = vmax.f32 %v707_v39, 0.0  ;;  %1440 = vmatmul.mubr.f32.gmra.mrb[26].mxu0 %v731_v36 }
 0x1ef   : > { %v732_v43 = vmax.f32 %v702_v41, 0.0  ;;  %v1391_v44 = vpop.f32.mrb[14].mxu1 }
 0x1f0   : > { %v717_v45 = vadd.f32 %v1391_v44, %v1187_v1  ;;  %v711_v46 = vpop.f32.mrb[15].mxu1 }
 0x1f1   : > { %v712_v47 = vadd.f32 %v1187_v1, %v711_v46  ;;  %1442 = vmatprep.mubr.f32.mxu1 %v732_v43 }
 0x1f2   : > { %v735_v48 = vmax.f32 %v717_v45, 0.0  ;;  %1443 = vmatmul.mubr.f32.vlgmr.msra.gmra.mrb[16].mxu1 %v733_v42 }
 0x1f3   : > { %v734_v49 = vmax.f32 %v712_v47, 0.0 }
 0x1f5   : > { %1445 = vmatprep.mubr.f32.mxu1 %v734_v49 }
 0x1f6   : > { %1446 = vmatmul.mubr.f32.gmra.mrb[18].mxu1 %v735_v48 }
 0x2ad   : > { %v1426_v51 = vpop.f32.mrb[16].mxu0 }
 0x2ae   : > { %v831_v52 = vadd.f32 %v1426_v51, %v1188_v50  ;;  %v825_v53 = vpop.f32.mrb[17].mxu0 }
 0x2af   : > { %v826_v55 = vadd.f32 %v1188_v50, %v825_v53 }
 0x2b0   : > { %906 = vmax.xlane.f32.xlu0 %v831_v52 }
 0x2b1   : > { %v1429_v54 = vpop.f32.mrb[18].mxu0 }
 0x2b2   : > { %v841_v56 = vadd.f32 %v1429_v54, %v1188_v50  ;;  %v835_v57 = vpop.f32.mrb[19].mxu0 }
 0x2b3   : > { %v836_v59 = vadd.f32 %v1188_v50, %v835_v57 }
 0x2b4   : > { %910 = vmax.xlane.f32.xlu1 %v841_v56  ;;  %904 = vmax.xlane.f32.xlu0 %v826_v55 }
 0x2b5   : > { %v1432_v58 = vpop.f32.mrb[20].mxu0 }
 0x2b6   : > { %v845_v60 = vpop.f32.mrb[21].mxu0  ;;  %v851_v63 = vadd.f32 %v1432_v58, %v1188_v50 }
 0x2b7   : > { %v846_v61 = vadd.f32 %v1188_v50, %v845_v60 }
 0x2b8   : > { %908 = vmax.xlane.f32.xlu1 %v836_v59 }
 0x2b9   : > { %v1435_v62 = vpop.f32.mrb[22].mxu0  ;;  %912 = vmax.xlane.f32.xlu0 %v846_v61 }
 0x2ba   : > { %v855_v0 = vpop.f32.mrb[23].mxu0  ;;  %v861_v3 = vadd.f32 %v1435_v62, %v1188_v50 }
 0x2bb   : > { %v856_v1 = vadd.f32 %v1188_v50, %v855_v0 }
 0x2bc   : > { %914 = vmax.xlane.f32.xlu1 %v851_v63 }
 0x2bd   : > { %v1438_v2 = vpop.f32.mrb[24].mxu0  ;;  %916 = vmax.xlane.f32.xlu0 %v856_v1 }
 0x2be   : > { %v865_v4 = vpop.f32.mrb[25].mxu0  ;;  %v871_v7 = vadd.f32 %v1438_v2, %v1188_v50 }
 0x2bf   : > { %v866_v5 = vadd.f32 %v1188_v50, %v865_v4 }
 0x2c0   : > { %918 = vmax.xlane.f32.xlu1 %v861_v3 }
 0x2c1   : > { %v1441_v6 = vpop.f32.mrb[26].mxu0  ;;  %920 = vmax.xlane.f32.xlu0 %v866_v5 }
 0x2c2   : > { %v875_v8 = vpop.f32.mrb[27].mxu0  ;;  %v881_v11 = vadd.f32 %v1441_v6, %v1188_v50 }
 0x2c3   : > { %v876_v9 = vadd.f32 %v1188_v50, %v875_v8 }
 0x2c4   : > { %922 = vmax.xlane.f32.xlu1 %v871_v7 }
 0x2c5   : > { %v1444_v10 = vpop.f32.mrb[16].mxu1  ;;  %924 = vmax.xlane.f32.xlu0 %v876_v9 }
 0x2c6   : > { %v885_v12 = vpop.f32.mrb[17].mxu1  ;;  %v2032_v15 = vadd.f32 %v1444_v10, %v1188_v50 }
 0x2c7   : > { %v2029_v13 = vadd.f32 %v1188_v50, %v885_v12 }
 0x2c8   : > { %926 = vmax.xlane.f32.xlu1 %v881_v11 }
 0x2c9   : > { %v1447_v14 = vpop.f32.mrb[18].mxu1  ;;  %928 = vmax.xlane.f32.xlu0 %v2029_v13 }
 0x2ca   : > { %v895_v16 = vpop.f32.mrb[19].mxu1  ;;  %v2038_v18 = vadd.f32 %v1447_v14, %v1188_v50 }
 0x2cb   : > { %v2034_v17 = vadd.f32 %v1188_v50, %v895_v16 }
 0x2cc   : > { %930 = vmax.xlane.f32.xlu1 %v2032_v15 }
 0x2cd   : > { %932 = vmax.xlane.f32.xlu0 %v2034_v17 }
 0x2d0   : > { %934 = vmax.xlane.f32.xlu1 %v2038_v18 }
 0x33d   : > { %v907_v19 = vpop.xlane.xlu0 %906 }
 0x33e   : > { %v2041_v20 = vsub.f32 %v831_v52, %v907_v19 }
 0x340   : > { %v954_v21 = vmul.f32 1.442695, %v2041_v20 }
 0x341   : > { %v911_v22 = vpop.xlane.xlu1 %910  ;;  %v905_v23 = vpop.xlane.xlu0 %904 }
 0x342   : > { %1588 = vpow2.f32 %v954_v21  ;;  %v2044_v24 = vsub.f32 %v841_v56, %v911_v22  ;;  %v2046_v25 = vsub.f32 %v826_v55, %v905_v23 }
 0x344   : > { %v958_v26 = vmul.f32 1.442695, %v2044_v24  ;;  %v952_v27 = vmul.f32 1.442695, %v2046_v25 }
 0x345   : > { %v909_v28 = vpop.xlane.xlu1 %908 }
 0x346   : > { %1590 = vpow2.f32 %v958_v26  ;;  %v2050_v29 = vsub.f32 %v836_v59, %v909_v28  ;;  %v913_v30 = vpop.xlane.xlu0 %912 }
 0x347   : > { %1592 = vpow2.f32 %v952_v27  ;;  %v2052_v31 = vsub.f32 %v846_v61, %v913_v30 }
 0x348   : > { %v956_v32 = vmul.f32 1.442695, %v2050_v29 }
 0x349   : > { %v915_v33 = vpop.xlane.xlu1 %914  ;;  %v960_v36 = vmul.f32 1.442695, %v2052_v31 }
 0x34a   : > { %1594 = vpow2.f32 %v956_v32  ;;  %v2055_v34 = vsub.f32 %v851_v63, %v915_v33  ;;  %v917_v35 = vpop.xlane.xlu0 %916 }
 0x34b   : > { %v2058_v37 = vsub.f32 %v856_v1, %v917_v35 }
 0x34c   : > { %v1589_v38 = vpop.eup %1588  ;;  %v962_v39 = vmul.f32 1.442695, %v2055_v34 }
 0x34d   : > { %986 = vadd.xlane.f32.xlu1 %v1589_v38  ;;  %v919_v40 = vpop.xlane.xlu1 %918  ;;  %v964_v43 = vmul.f32 1.442695, %v2058_v37 }
 0x34e   : > { %1596 = vpow2.f32 %v962_v39  ;;  %v2061_v41 = vsub.f32 %v861_v3, %v919_v40  ;;  %v921_v42 = vpop.xlane.xlu0 %920 }
 0x34f   : > { %1598 = vpow2.f32 %v960_v36  ;;  %v2064_v44 = vsub.f32 %v866_v5, %v921_v42 }
 0x350   : > { %v1591_v45 = vpop.eup %1590  ;;  %v966_v46 = vmul.f32 1.442695, %v2061_v41 }
 0x351   : > { %v1593_v47 = vpop.eup %1592  ;;  %990 = vadd.xlane.f32.xlu1 %v1591_v45  ;;  %v923_v48 = vpop.xlane.xlu1 %922  ;;  %v968_v51 = vmul.f32 1.442695, %v2064_v44 }
 0x352   : > { %1600 = vpow2.f32 %v966_v46  ;;  %v2067_v49 = vsub.f32 %v871_v7, %v923_v48  ;;  %984 = vadd.xlane.f32.xlu0 %v1593_v47  ;;  %v925_v50 = vpop.xlane.xlu0 %924 }
 0x353   : > { %1602 = vpow2.f32 %v964_v43  ;;  %v2070_v52 = vsub.f32 %v876_v9, %v925_v50 }
 0x354   : > { %v1595_v53 = vpop.eup %1594  ;;  %v970_v54 = vmul.f32 1.442695, %v2067_v49 }
 0x355   : > { %v927_v55 = vpop.xlane.xlu1 %926  ;;  %v972_v58 = vmul.f32 1.442695, %v2070_v52 }
 0x356   : > { %1604 = vpow2.f32 %v970_v54  ;;  %v2073_v56 = vsub.f32 %v881_v11, %v927_v55  ;;  %988 = vadd.xlane.f32.xlu0 %v1595_v53  ;;  %v929_v57 = vpop.xlane.xlu0 %928 }
 0x357   : > { %1606 = vpow2.f32 %v968_v51  ;;  %v2077_v59 = vsub.f32 %v2029_v13, %v929_v57 }
 0x358   : > { %v1597_v60 = vpop.eup %1596  ;;  %v974_v61 = vmul.f32 1.442695, %v2073_v56 }
 0x359   : > { %v1599_v62 = vpop.eup %1598  ;;  %994 = vadd.xlane.f32.xlu1 %v1597_v60  ;;  %v931_v63 = vpop.xlane.xlu1 %930  ;;  %v976_v2 = vmul.f32 1.442695, %v2077_v59 }
 0x35a   : > { %1608 = vpow2.f32 %v974_v61  ;;  %v2081_v0 = vsub.f32 %v2032_v15, %v931_v63  ;;  %992 = vadd.xlane.f32.xlu0 %v1599_v62  ;;  %v933_v1 = vpop.xlane.xlu0 %932 }
 0x35b   : > { %1610 = vpow2.f32 %v972_v58  ;;  %v2085_v3 = vsub.f32 %v2034_v17, %v933_v1 }
 0x35c   : > { %v1601_v4 = vpop.eup %1600  ;;  %v978_v5 = vmul.f32 1.442695, %v2081_v0 }
 0x35d   : > { %v1603_v6 = vpop.eup %1602  ;;  %998 = vadd.xlane.f32.xlu1 %v1601_v4  ;;  %v935_v7 = vpop.xlane.xlu1 %934  ;;  %v980_v9 = vmul.f32 1.442695, %v2085_v3 }
 0x35e   : > { %1612 = vpow2.f32 %v978_v5  ;;  %v2089_v8 = vsub.f32 %v2038_v18, %v935_v7  ;;  %996 = vadd.xlane.f32.xlu0 %v1603_v6 }
 0x35f   : > { %1614 = vpow2.f32 %v976_v2 }
 0x360   : > { %v1605_v10 = vpop.eup %1604  ;;  %v982_v11 = vmul.f32 1.442695, %v2089_v8 }
 0x361   : > { %v1607_v12 = vpop.eup %1606  ;;  %1002 = vadd.xlane.f32.xlu1 %v1605_v10 }
 0x362   : > { %1616 = vpow2.f32 %v982_v11  ;;  %1000 = vadd.xlane.f32.xlu0 %v1607_v12 }
 0x363   : > { %1618 = vpow2.f32 %v980_v9 }
 0x364   : > { %v1609_v13 = vpop.eup %1608 }
 0x365   : > { %v1611_v14 = vpop.eup %1610  ;;  %1006 = vadd.xlane.f32.xlu1 %v1609_v13 }
 0x366   : > { %1004 = vadd.xlane.f32.xlu0 %v1611_v14 }
 0x368   : > { %v1613_v15 = vpop.eup %1612 }
 0x369   : > { %v1615_v16 = vpop.eup %1614  ;;  %1010 = vadd.xlane.f32.xlu1 %v1613_v15 }
 0x36a   : > { %1008 = vadd.xlane.f32.xlu0 %v1615_v16 }
 0x36c   : > { %v1617_v17 = vpop.eup %1616 }
 0x36d   : > { %v1619_v18 = vpop.eup %1618  ;;  %1014 = vadd.xlane.f32.xlu1 %v1617_v17 }
 0x36e   : > { %1012 = vadd.xlane.f32.xlu0 %v1619_v18 }
 0x3da   : > { %v987_v19 = vpop.xlane.xlu1 %986 }
 0x3db   : > { %1620 = vlog2.f32 %v987_v19 }
 0x3de   : > { %v991_v21 = vpop.xlane.xlu1 %990 }
 0x3df   : > { %1622 = vlog2.f32 %v991_v21  ;;  %v985_v22 = vpop.xlane.xlu0 %984 }
 0x3e0   : > { %1624 = vlog2.f32 %v985_v22 }
 0x3e3   : > { %v989_v23 = vpop.xlane.xlu0 %988 }
 0x3e4   : > { %1626 = vlog2.f32 %v989_v23 }
 0x3e5   : > { %v1621_v26 = vpop.eup %1620 }
 0x3e6   : > { %v1019_v27 = vmul.f32 0.6931472, %v1621_v26  ;;  %v995_v28 = vpop.xlane.xlu1 %994 }
 0x3e7   : > { %1628 = vlog2.f32 %v995_v28  ;;  %v993_v30 = vpop.xlane.xlu0 %992 }
 0x3e8   : > { %v1049_v32 = vsub.f32 %v2041_v20, %v1019_v27  ;;  %1630 = vlog2.f32 %v993_v30 }
 0x3e9   : > { %v1623_v33 = vpop.eup %1622 }
 0x3ea   : > { %v1625_v35 = vpop.eup %1624  ;;  %1065 = vst [vmem:[%s2097_s29 + $0x8] sm:$0xff] %v1049_v32  ;;  %v1023_v36 = vmul.f32 0.6931472, %v1623_v33  ;;  %v999_v38 = vpop.xlane.xlu1 %998 }
 0x3eb   : > { %v1017_v39 = vmul.f32 0.6931472, %v1625_v35  ;;  %1632 = vlog2.f32 %v999_v38  ;;  %v997_v40 = vpop.xlane.xlu0 %996 }
 0x3ec   : > { %v1051_v42 = vsub.f32 %v2044_v24, %v1023_v36  ;;  %1634 = vlog2.f32 %v997_v40 }
 0x3ed   : > { %v1048_v20 = vsub.f32 %v2046_v25, %v1017_v39 }
 0x3ee   : > { %v1627_v43 = vpop.eup %1626  ;;  %1067 = vst [vmem:[%s2097_s29 + $0x18] sm:$0xff] %v1051_v42  ;;  %v1003_v45 = vpop.xlane.xlu1 %1002 }
 0x3ef   : > { %1064 = vst [vmem:[%s2097_s29] sm:$0xff] %v1048_v20  ;;  %v1021_v46 = vmul.f32 0.6931472, %v1627_v43  ;;  %1636 = vlog2.f32 %v1003_v45  ;;  %v1001_v47 = vpop.xlane.xlu0 %1000 }
 0x3f0   : > { %1638 = vlog2.f32 %v1001_v47 }
 0x3f1   : > { %v1629_v48 = vpop.eup %1628  ;;  %v1050_v50 = vsub.f32 %v2050_v29, %v1021_v46 }
 0x3f2   : > { %v1631_v51 = vpop.eup %1630  ;;  %v1027_v53 = vmul.f32 0.6931472, %v1629_v48  ;;  %v1007_v24 = vpop.xlane.xlu1 %1006 }
 0x3f3   : > { %1066 = vst [vmem:[%s2097_s29 + $0x10] sm:$0xff] %v1050_v50  ;;  %v1025_v54 = vmul.f32 0.6931472, %v1631_v51  ;;  %1640 = vlog2.f32 %v1007_v24  ;;  %v1005_v25 = vpop.xlane.xlu0 %1004 }
 0x3f4   : > { %v1053_v55 = vsub.f32 %v2055_v34, %v1027_v53  ;;  %1642 = vlog2.f32 %v1005_v25 }
 0x3f5   : > { %v1633_v57 = vpop.eup %1632  ;;  %v1052_v58 = vsub.f32 %v2052_v31, %v1025_v54 }
 0x3f6   : > { %v1635_v60 = vpop.eup %1634  ;;  %1069 = vst [vmem:[%s2097_s29 + $0x28] sm:$0xff] %v1053_v55  ;;  %v1031_v61 = vmul.f32 0.6931472, %v1633_v57  ;;  %v1011_v29 = vpop.xlane.xlu1 %1010 }
 0x3f7   : > { %1068 = vst [vmem:[%s2097_s29 + $0x20] sm:$0xff] %v1052_v58  ;;  %v1029_v62 = vmul.f32 0.6931472, %v1635_v60  ;;  %1644 = vlog2.f32 %v1011_v29  ;;  %v1009_v63 = vpop.xlane.xlu0 %1008 }
 0x3f8   : > { %v1055_v1 = vsub.f32 %v2061_v41, %v1031_v61  ;;  %1646 = vlog2.f32 %v1009_v63 }
 0x3f9   : > { %v1637_v2 = vpop.eup %1636  ;;  %v1054_v34 = vsub.f32 %v2058_v37, %v1029_v62 }
 0x3fa   : > { %v1639_v4 = vpop.eup %1638  ;;  %1071 = vst [vmem:[%s2097_s29 + $0x38] sm:$0xff] %v1055_v1  ;;  %v1035_v31 = vmul.f32 0.6931472, %v1637_v2  ;;  %v1015_v5 = vpop.xlane.xlu1 %1014 }
 0x3fb   : > { %1070 = vst [vmem:[%s2097_s29 + $0x30] sm:$0xff] %v1054_v34  ;;  %v1033_v6 = vmul.f32 0.6931472, %v1639_v4  ;;  %1648 = vlog2.f32 %v1015_v5  ;;  %v1013_v7 = vpop.xlane.xlu0 %1012 }
 0x3fc   : > { %v1057_v9 = vsub.f32 %v2067_v49, %v1035_v31  ;;  %1650 = vlog2.f32 %v1013_v7 }
 0x3fd   : > { %v1641_v41 = vpop.eup %1640  ;;  %v1056_v10 = vsub.f32 %v2064_v44, %v1033_v6 }
 0x3fe   : > { %v1643_v11 = vpop.eup %1642  ;;  %1073 = vst [vmem:[%s2097_s29 + $0x48] sm:$0xff] %v1057_v9  ;;  %v1039_v37 = vmul.f32 0.6931472, %v1641_v41 }
 0x3ff   : > { %1072 = vst [vmem:[%s2097_s29 + $0x40] sm:$0xff] %v1056_v10  ;;  %v1037_v12 = vmul.f32 0.6931472, %v1643_v11 }
 0x400   : > { %v1059_v13 = vsub.f32 %v2073_v56, %v1039_v37 }
 0x401   : > { %v1645_v14 = vpop.eup %1644  ;;  %v1058_v15 = vsub.f32 %v2070_v52, %v1037_v12 }
 0x402   : > { %v1647_v16 = vpop.eup %1646  ;;  %1075 = vst [vmem:[%s2097_s29 + $0x58] sm:$0xff] %v1059_v13  ;;  %v1043_v49 = vmul.f32 0.6931472, %v1645_v14 }
 0x403   : > { %1074 = vst [vmem:[%s2097_s29 + $0x50] sm:$0xff] %v1058_v15  ;;  %v1041_v44 = vmul.f32 0.6931472, %v1647_v16 }
 0x404   : > { %v1061_v17 = vsub.f32 %v2081_v0, %v1043_v49 }
 0x405   : > { %v1649_v18 = vpop.eup %1648  ;;  %v1060_v19 = vsub.f32 %v2077_v59, %v1041_v44  ;;  %1087 = sbr.rel (!%p1797_p5) target bundleno = 1064 (0x428), region = 52 }
 0x406   : > { %v1651_v21 = vpop.eup %1650  ;;  %1077 = vst [vmem:[%s2097_s29 + $0x68] sm:$0xff] %v1061_v17  ;;  %v1047_v22 = vmul.f32 0.6931472, %v1649_v18 }
 0x407   : > { %1076 = vst [vmem:[%s2097_s29 + $0x60] sm:$0xff] %v1060_v19  ;;  %v1045_v56 = vmul.f32 0.6931472, %v1651_v21 }
 0x408   : > { %v1063_v52 = vsub.f32 %v2089_v8, %v1047_v22 }
 0x409   : > { %v1062_v23 = vsub.f32 %v2085_v3, %v1045_v56 }
 0x40a   : > { %1079 = vst [vmem:[%s2097_s29 + $0x78] sm:$0xff] %v1063_v52 }
 0x40b   : > { %1078 = vst [vmem:[%s2097_s29 + $0x70] sm:$0xff] %v1062_v23 }
 0x40c   : > { %s2208_s13 = smov (!%p1090_p11, %s1089_s13), 16 }
 0x40d   : > { %s2137_s16 = sshll.u32 %s2208_s13, 7 }
 0x40e   : > { %s1094_s14 = ssub.s32 2048, %s2137_s16 }
 0x40f   : > { %1095 = vsyncadd %s2132_s8, %s1094_s14  ;;  %p1192_p12 = scmp.ne.s32.totalorder %s2137_s16, 0  ;;  %s1198_s15 = sshll.u32 %s1780_s28, 11 }
 0x410   : > { %s2146_s17 = scalar_lea.hbm %s2200_s7, %s1198_s15  ;;  %s1100_s19 = sshll.u32 %s2097_s29, 4  ;;  %s2149_s19 = int_to_ptr.vmem [resolvable:$true] %s1100_s19 }
 0x411   : > { %s1652_s18 = scalar_lea.vmem %s2149_s19, %s2137_s16  ;;  %s1716_s20 = smov [#allocation2]  }
 0x412   : > { %p1653_p13 = scmp.ne.s32.totalorder %s2149_s19, %s1652_s18  ;;  %s1656_s21 = sshll.u32 %s1716_s20, 4  ;;  %s1657_s21 = int_to_ptr.vmem [resolvable:$false] %s1656_s21 }
 0x413   : > { %s1658_s28 = scalar_lea.vmem %s1657_s21, 4096  ;;  %p1659_p2 = scmp.lt.s32.totalorder %s2149_s19, %s1657_s21 }
 0x414   : > { %p1654_p0 = pnand %p1653_p13, %p1192_p12  ;;  %p1660_p3 = scmp.lt.s32.totalorder %s1658_s28, %s1652_s18 }
 0x416   : > { %p1655_p1 = pneg %p1654_p0  ;;  %p1661_p4 = por %p1660_p3, %p1659_p2 }
 0x418   : > { %p1662_p5 = pnand %p1661_p4, %p1655_p1 }
 0x41a   : > { %1665 = shalt.err (!%p1662_p5)
}
 0x41b   : > { %s1666_s22 = scalar_lea.hbm %s2146_s17, %s2137_s16  ;;  %s1670_s13 = scalar_lea.hbm %s2200_s7, 4864 }
 0x41c   : > { %p1667_p7 = scmp.ne.s32.totalorder %s2146_s17, %s1666_s22  ;;  %p1671_p10 = scmp.lt.u32.totalorder %s2146_s17, %s2200_s7 }
 0x41d   : > { %p1672_p11 = scmp.lt.u32.totalorder %s1670_s13, %s1666_s22  ;;  %p1674_p0 = scmp.lt.u32.totalorder %s1666_s22, %s2146_s17 }
 0x41e   : > { %p1668_p8 = pnand %p1667_p7, %p1192_p12 }
 0x41f   : > { %p1673_p13 = por %p1672_p11, %p1671_p10 }
 0x420   : > { %p1669_p9 = pneg %p1668_p8 }
 0x421   : > { %p1675_p1 = por %p1674_p0, %p1673_p13 }
 0x423   : > { %p1676_p2 = pnand %p1675_p1, %p1669_p9 }
 0x425   : > { %1679 = shalt.err (!%p1676_p2)
}
 0x426   : > { %s1717_s9 = smov 128   ;;  %s1718_s11 = smov 8  }
 0x427   : > { %1106 = dma.vmem_to_hbm [thread:$0]  (%p1192_p12), %s2149_s19, %s2137_s16, %s2146_s17, %s2132_s8, %s1717_s9, %s1717_s9, %s1718_s11  }
 0x428 PF: > { %p1553_p3 = scmp.ge.s32.totalorder %s1714_s27, 2  ;;  %s1115_s18 = sand.u32 1, %s1702_s24  }
 0x429   : > { %s1116_s20 = scalar_lea.sflag [#allocation3], %s1115_s18 }
 0x42a   : > { %p1550_p4 = pnand %p1553_p3, %p1801_p6 }
 0x42c   : > { %1697 = dma.done.wait (!%p1550_p4), %s1116_s20, 2048  }
 0x42d   : > { %1699 = vsyncadd (!%p1550_p4), %s1116_s20, 4294965248  ;;  %p17_p5 = scmp.ge.s32.totalorder %s1784_s30, 5   ;;  %s2203_s24 = smov %s1706_s25 }
 0x42e   : > { %s2204_s25 = smov %s1710_s26  ;;  %s2205_s26 = smov %s1795_s10 }
 0x42f   : > { %s2206_s27 = smov %s1784_s30  ;;  %19 = sbr.rel (!%p17_p5) target bundleno = 3 (0x3), region = 83 }
 0x436   :  { %1121 = vsyncpa [#allocation3], 1 }
 0x437   :  { %1123 = vsyncpa [#allocation3 + $0x1], 1 }

</bundles_post_ra>
